<compile_context>
chip_gen: v5e
topology: v5e:2x2
jax: 0.10.0
libtpu: 0.0.40
codegen_flags: <defaults>
</compile_context>

<pallas_src>
import jax
import jax.numpy as jnp
from jax.experimental import pallas as pl
from jax.experimental.pallas import tpu as pltpu

LANE = 128


def _round_up(x, m):
    return (x + m - 1) // m * m


def critic_kernel(x_ref, w1_ref, b1_ref, w2_ref, b2_ref, w3_ref, b3_ref, o_ref):
    x = x_ref[...]                                              # (TB, S) bf16
    # fc1 + ReLU: bf16 MXU operands, f32 accumulation; bias/ReLU in f32.
    h1 = jnp.dot(x, w1_ref[...],
                 preferred_element_type=jnp.float32) + b1_ref[...]
    h1 = jnp.maximum(h1, 0.0)                                   # (TB, H_pad) f32
    # fc2 + ReLU
    h2 = jnp.dot(h1.astype(jnp.bfloat16), w2_ref[...],
                 preferred_element_type=jnp.float32) + b2_ref[...]
    h2 = jnp.maximum(h2, 0.0)                                   # (TB, H_pad) f32
    # fc3 (value_size == 1): VPU multiply + lane reduction -> narrow (TB, 1) store.
    out = jnp.sum(h2 * w3_ref[...], axis=-1, keepdims=True) + b3_ref[...]
    o_ref[...] = out.astype(o_ref.dtype)                        # (TB, 1) f32


def _choose_batch_tile(B, max_batch_tile):
    # Aim for >= 2 grid steps on large B (v7x has 2 TensorCores); tiles are a
    # multiple of 16 (bf16 sublane packing) unless a single full-array tile is used.
    half = (B + 1) // 2
    tb = min(max_batch_tile, _round_up(max(half, 1), 16))
    if tb >= B:
        return B, B                       # single tile == full array (always legal)
    return tb, _round_up(B, tb)


def critic_forward(states, params, *, value_size=1, max_batch_tile=2048):
    """states: (B, state_size) f32/bf16; params: dict from init_critic_params."""
    assert value_size == 1, "VPU fc3 path assumes value_size == 1 (module default)"
    w1, b1, w2, b2, w3, b3 = (params[k] for k in ("w1", "b1", "w2", "b2", "w3", "b3"))
    B, S = states.shape
    H_pad = w1.shape[1]
    H = int(params["hidden_size"])

    TB, B_pad = _choose_batch_tile(B, max_batch_tile)

    x = states.astype(jnp.bfloat16)
    if B_pad != B:
        x = jnp.pad(x, ((0, B_pad - B), (0, 0)))

    grid = (B_pad // TB,)
    const = lambda i: (0, 0)   # weights/biases resident in VMEM across the grid

    # Honest cost estimate on true (unpadded) dims / actual traffic.
    flops = 2 * B * (S * H + H * H + H * value_size)
    bytes_accessed = (B * S * 2                      # x (bf16)
                      + B * value_size * 4           # output (f32)
                      + (S * H + H * H) * 2          # bf16 weights, read once
                      + (2 * H + H + 1) * 4)         # f32 biases + w3 row

    out = pl.pallas_call(
        critic_kernel,
        out_shape=jax.ShapeDtypeStruct((B_pad, 1), jnp.float32),
        grid=grid,
        in_specs=[
            pl.BlockSpec((TB, S), lambda i: (i, 0)),    # states: tiled over batch
            pl.BlockSpec((S, H_pad), const),            # w1 (bf16)
            pl.BlockSpec((1, H_pad), const),            # b1 (f32)
            pl.BlockSpec((H_pad, H_pad), const),        # w2 (bf16)
            pl.BlockSpec((1, H_pad), const),            # b2 (f32)
            pl.BlockSpec((1, H_pad), const),            # w3 row (f32)
            pl.BlockSpec((1, 1), const),                # b3 (f32)
        ],
        out_specs=pl.BlockSpec((TB, 1), lambda i: (i, 0)),
        compiler_params=pltpu.CompilerParams(
            dimension_semantics=("parallel",)),
        cost_estimate=pl.CostEstimate(flops=flops, transcendentals=0,
                                      bytes_accessed=bytes_accessed),
    )(x, w1, b1, w2, b2, w3, b3)

    return out[:B] if B_pad != B else out            # (B, 1)


def init_critic_params(key, state_size, value_size=1, hidden_size=64):
    """PyTorch nn.Linear default init (U(-k,k), k=1/sqrt(fan_in)).
    Weights stored transposed as (in, out); hidden dim zero-padded to 128 lanes;
    w1/w2 stored bf16 (MXU operands), biases and w3 kept f32.
    Returns (kernel_params, native_f32_params)."""
    assert value_size == 1
    def linear(key, fan_in, fan_out):
        kw, kb = jax.random.split(key)
        bound = 1.0 / jnp.sqrt(jnp.float32(fan_in))
        w = jax.random.uniform(kw, (fan_in, fan_out), jnp.float32, -bound, bound)
        b = jax.random.uniform(kb, (1, fan_out), jnp.float32, -bound, bound)
        return w, b

    def pad_cols(a, cols):
        return jnp.zeros((a.shape[0], cols), a.dtype).at[:, :a.shape[1]].set(a)

    def pad2(a, rows, cols):
        return jnp.zeros((rows, cols), a.dtype).at[:a.shape[0], :a.shape[1]].set(a)

    H_pad = _round_up(hidden_size, LANE)

    k1, k2, k3 = jax.random.split(key, 3)
    w1, b1 = linear(k1, state_size, hidden_size)
    w2, b2 = linear(k2, hidden_size, hidden_size)
    w3, b3 = linear(k3, hidden_size, value_size)

    padded = {
        "w1": pad_cols(w1.astype(jnp.bfloat16), H_pad),            # (S, H_pad) bf16
        "b1": pad_cols(b1, H_pad),                                  # (1, H_pad) f32
        "w2": pad2(w2.astype(jnp.bfloat16), H_pad, H_pad),          # (H_pad, H_pad) bf16
        "b2": pad_cols(b2, H_pad),                                  # (1, H_pad) f32
        "w3": pad_cols(w3.T, H_pad),                                # (1, H_pad) f32
        "b3": b3.reshape(1, 1),                                     # (1, 1) f32
        "hidden_size": hidden_size,
    }
    native = {"w1": w1, "b1": b1, "w2": w2, "b2": b2, "w3": w3, "b3": b3}
    return padded, native


if __name__ == "__main__":
    key = jax.random.PRNGKey(0)
    k_params, k_states = jax.random.split(key)

    batch = 8
    state_size = 16
    hidden_size = 64
    value_size = 1

    kernel_params, native = init_critic_params(
        k_params, state_size, value_size, hidden_size)
    states = jax.random.normal(k_states, (batch, state_size), jnp.float32)

    values = critic_forward(states, kernel_params, value_size=value_size)
    jax.block_until_ready(values)

    # Pure-f32 reference with the same semantics as the PyTorch forward.
    h1 = jnp.maximum(states @ native["w1"] + native["b1"], 0.0)
    h2 = jnp.maximum(h1 @ native["w2"] + native["b2"], 0.0)
    ref = h2 @ native["w3"] + native["b3"]

    assert values.shape == (batch, value_size)
    # fc1/fc2 use bf16 weights / MXU operands (f32 accumulate) -> bf16-level error.
    assert jnp.allclose(values, ref, atol=2e-2, rtol=2e-2), (
        float(jnp.max(jnp.abs(values - ref))))

    print("KERNEL_OK")
</pallas_src>

<mosaic_0001>
module attributes {stable_mosaic.version = 11 : i64} {
  func.func @critic_kernel(%arg0: i32, %arg1: memref<8x16xbf16, #tpu.memory_space<vmem>>, %arg2: memref<16x128xbf16, #tpu.memory_space<vmem>>, %arg3: memref<1x128xf32, #tpu.memory_space<vmem>>, %arg4: memref<128x128xbf16, #tpu.memory_space<vmem>>, %arg5: memref<1x128xf32, #tpu.memory_space<vmem>>, %arg6: memref<1x128xf32, #tpu.memory_space<vmem>>, %arg7: memref<1x1xf32, #tpu.memory_space<vmem>>, %arg8: memref<8x1xf32, #tpu.memory_space<vmem>>) attributes {dimension_semantics = [#tpu.dimension_semantics<parallel>], iteration_bounds = array<i64: 1>, scalar_prefetch = 0 : i64, scratch_operands = 0 : i64, tpu.core_type = #tpu.core_type<tc>, window_params = [{transform_indices = @transform_0, window_bounds = array<i64: 8, 16>}, {pipeline_mode = #tpu.pipeline_mode<synchronous>, transform_indices = @transform_1, window_bounds = array<i64: 16, 128>}, {pipeline_mode = #tpu.pipeline_mode<synchronous>, transform_indices = @transform_2, window_bounds = array<i64: 1, 128>}, {pipeline_mode = #tpu.pipeline_mode<synchronous>, transform_indices = @transform_3, window_bounds = array<i64: 128, 128>}, {pipeline_mode = #tpu.pipeline_mode<synchronous>, transform_indices = @transform_4, window_bounds = array<i64: 1, 128>}, {pipeline_mode = #tpu.pipeline_mode<synchronous>, transform_indices = @transform_5, window_bounds = array<i64: 1, 128>}, {pipeline_mode = #tpu.pipeline_mode<synchronous>, transform_indices = @transform_6, window_bounds = array<i64: 1, 1>}, {transform_indices = @transform_7, window_bounds = array<i64: 8, 1>}]} {
    %c0 = arith.constant 0 : index
    %c0_0 = arith.constant 0 : index
    %0 = vector.load %arg1[%c0, %c0_0] : memref<8x16xbf16, #tpu.memory_space<vmem>>, vector<8x16xbf16>
    %c0_1 = arith.constant 0 : index
    %c0_2 = arith.constant 0 : index
    %1 = vector.load %arg2[%c0_1, %c0_2] : memref<16x128xbf16, #tpu.memory_space<vmem>>, vector<16x128xbf16>
    %cst = arith.constant dense<0.000000e+00> : vector<8x128xf32>
    %2 = tpu.matmul %0, %1, %cst {dimension_numbers = #tpu.dot_dimension_numbers<[1], [0], [0], [1], [0, 0, 1, 1], [], []>} : vector<8x16xbf16>, vector<16x128xbf16>, vector<8x128xf32> -> vector<8x128xf32>
    %c0_3 = arith.constant 0 : index
    %c0_4 = arith.constant 0 : index
    %3 = vector.load %arg3[%c0_3, %c0_4] : memref<1x128xf32, #tpu.memory_space<vmem>>, vector<1x128xf32>
    %4 = vector.broadcast %3 : vector<1x128xf32> to vector<8x128xf32>
    %5 = arith.addf %2, %4 : vector<8x128xf32>
    %cst_5 = arith.constant 0.000000e+00 : f32
    %6 = vector.broadcast %cst_5 : f32 to vector<8x128xf32>
    %7 = arith.maximumf %5, %6 : vector<8x128xf32>
    %8 = arith.truncf %7 : vector<8x128xf32> to vector<8x128xbf16>
    %c0_6 = arith.constant 0 : index
    %c0_7 = arith.constant 0 : index
    %9 = vector.load %arg4[%c0_6, %c0_7] : memref<128x128xbf16, #tpu.memory_space<vmem>>, vector<128x128xbf16>
    %cst_8 = arith.constant dense<0.000000e+00> : vector<8x128xf32>
    %10 = tpu.matmul %8, %9, %cst_8 {dimension_numbers = #tpu.dot_dimension_numbers<[1], [0], [0], [1], [0, 0, 1, 1], [], []>} : vector<8x128xbf16>, vector<128x128xbf16>, vector<8x128xf32> -> vector<8x128xf32>
    %c0_9 = arith.constant 0 : index
    %c0_10 = arith.constant 0 : index
    %11 = vector.load %arg5[%c0_9, %c0_10] : memref<1x128xf32, #tpu.memory_space<vmem>>, vector<1x128xf32>
    %12 = vector.broadcast %11 : vector<1x128xf32> to vector<8x128xf32>
    %13 = arith.addf %10, %12 : vector<8x128xf32>
    %cst_11 = arith.constant 0.000000e+00 : f32
    %14 = vector.broadcast %cst_11 : f32 to vector<8x128xf32>
    %15 = arith.maximumf %13, %14 : vector<8x128xf32>
    %c0_12 = arith.constant 0 : index
    %c0_13 = arith.constant 0 : index
    %16 = vector.load %arg6[%c0_12, %c0_13] : memref<1x128xf32, #tpu.memory_space<vmem>>, vector<1x128xf32>
    %17 = vector.broadcast %16 : vector<1x128xf32> to vector<8x128xf32>
    %18 = arith.mulf %15, %17 : vector<8x128xf32>
    %cst_14 = arith.constant dense<0.000000e+00> : vector<8xf32>
    %19 = vector.multi_reduction <add>, %18, %cst_14 [1] : vector<8x128xf32> to vector<8xf32>
    %20 = vector.shape_cast %19 : vector<8xf32> to vector<8x1xf32>
    %c0_15 = arith.constant 0 : index
    %c0_16 = arith.constant 0 : index
    %21 = vector.load %arg7[%c0_15, %c0_16] : memref<1x1xf32, #tpu.memory_space<vmem>>, vector<1x1xf32>
    %22 = vector.broadcast %21 : vector<1x1xf32> to vector<8x1xf32>
    %23 = arith.addf %20, %22 : vector<8x1xf32>
    %c0_17 = arith.constant 0 : index
    %c0_18 = arith.constant 0 : index
    %24 = vector.load %arg8[%c0_17, %c0_18] : memref<8x1xf32, #tpu.memory_space<vmem>>, vector<8x1xf32>
    tpu.vector_store %arg8[%c0_17, %c0_18], %23 {strides = array<i32>} : memref<8x1xf32, #tpu.memory_space<vmem>>, vector<8x1xf32>,
    return
  }
  func.func @transform_0(%arg0: i32) -> (i32, i32) {
    %c0_i32 = arith.constant 0 : i32
    %c0_i32_0 = arith.constant 0 : i32
    return %arg0, %c0_i32 : i32, i32
  }
  func.func @transform_1(%arg0: i32) -> (i32, i32) {
    %c0_i32 = arith.constant 0 : i32
    %c0_i32_0 = arith.constant 0 : i32
    %c0_i32_1 = arith.constant 0 : i32
    return %c0_i32, %c0_i32_0 : i32, i32
  }
  func.func @transform_2(%arg0: i32) -> (i32, i32) {
    %c0_i32 = arith.constant 0 : i32
    %c0_i32_0 = arith.constant 0 : i32
    %c0_i32_1 = arith.constant 0 : i32
    return %c0_i32, %c0_i32_0 : i32, i32
  }
  func.func @transform_3(%arg0: i32) -> (i32, i32) {
    %c0_i32 = arith.constant 0 : i32
    %c0_i32_0 = arith.constant 0 : i32
    %c0_i32_1 = arith.constant 0 : i32
    return %c0_i32, %c0_i32_0 : i32, i32
  }
  func.func @transform_4(%arg0: i32) -> (i32, i32) {
    %c0_i32 = arith.constant 0 : i32
    %c0_i32_0 = arith.constant 0 : i32
    %c0_i32_1 = arith.constant 0 : i32
    return %c0_i32, %c0_i32_0 : i32, i32
  }
  func.func @transform_5(%arg0: i32) -> (i32, i32) {
    %c0_i32 = arith.constant 0 : i32
    %c0_i32_0 = arith.constant 0 : i32
    %c0_i32_1 = arith.constant 0 : i32
    return %c0_i32, %c0_i32_0 : i32, i32
  }
  func.func @transform_6(%arg0: i32) -> (i32, i32) {
    %c0_i32 = arith.constant 0 : i32
    %c0_i32_0 = arith.constant 0 : i32
    %c0_i32_1 = arith.constant 0 : i32
    return %c0_i32, %c0_i32_0 : i32, i32
  }
  func.func @transform_7(%arg0: i32) -> (i32, i32) {
    %c0_i32 = arith.constant 0 : i32
    %c0_i32_0 = arith.constant 0 : i32
    return %arg0, %c0_i32 : i32, i32
  }
}

</mosaic_0001>

<bundles_post_ra>
// kernel: tpu_custom_call.1
= control target key start
LH: loop header
LB: loop body
LE: loop exit
PB: predicated region body
PF: predicated region fallthrough
CT: control target
= control target key end

     0   :  { %s408_s0 = inlined_call_operand.hbm [shape: bf16[8,16], index: 0, kind: input, shape index: {}]   ;;  %s409_s1 = inlined_call_operand.hbm [shape: bf16[16,128], index: 1, kind: input, shape index: {}]   ;;  %s410_s2 = inlined_call_operand.vmem [shape: f32[1,128], index: 2, kind: input, shape index: {}]   ;;  %s411_s3 = inlined_call_operand.hbm [shape: bf16[128,128], index: 3, kind: input, shape index: {}]   ;;  %s412_s4 = inlined_call_operand.vmem [shape: f32[1,128], index: 4, kind: input, shape index: {}]   ;;  %s413_s5 = inlined_call_operand.vmem [shape: f32[1,128], index: 5, kind: input, shape index: {}]   ;;  %s414_s6 = inlined_call_operand.<no memory space> [shape: f32[1,1], index: 6, kind: input, shape index: {}]   ;;  %s415_s7 = inlined_call_operand.vmem [shape: f32[8,1], index: 7, kind: output, shape index: {}]  }
   0x1   :  { %v12_v0 = vstv %s414_s6 }
   0x2   :  { %13 = vst [vmem:[#allocation2] sm:$0x1] %v12_v0 }
   0x3   :  { %14 = vsyncpa [#allocation4], 0 }
   0x4   :  { %15 = vsyncpa [#allocation6], 0  ;;  %s31_s28 = sshll.u32 %s409_s1, 4  ;;  %s339_s29 = smov [#allocation5]   ;;  %s32_s28 = int_to_ptr.hbm [resolvable:$true] %s31_s28 }
   0x5   :  { %s33_s30 = sshll.u32 %s339_s29, 4  ;;  %s21_s10 = sshll.u32 %s408_s0, 4  ;;  %s34_s30 = int_to_ptr.vmem [resolvable:$true] %s33_s30  ;;  %s22_s10 = int_to_ptr.hbm [resolvable:$true] %s21_s10 }
   0x6   :  { %s340_s11 = smov 64   ;;  %s341_s12 = smov 4  }
   0x7   :  { %39 = dma.hbm_to_vmem [thread:$0]  %s32_s28, 128, %s34_s30, [#allocation6], %s340_s11, %s340_s11, %s341_s12  }
   0x8   :  { %s342_s6 = smov [#allocation3]   ;;  %s46_s16 = sshll.u32 %s411_s3, 4  ;;  %s47_s16 = int_to_ptr.hbm [resolvable:$true] %s46_s16 }
   0x9   :  { %s23_s13 = sshll.u32 %s342_s6, 4  ;;  %s343_s1 = smov [#allocation7]   ;;  %s24_s13 = int_to_ptr.vmem [resolvable:$true] %s23_s13 }
   0xa   :  { %26 = dma.hbm_to_vmem [thread:$0]  %s22_s10, 64, %s24_s13, [#allocation4]  }
   0xb   :  { %s48_s17 = sshll.u32 %s343_s1, 4  ;;  %s49_s17 = int_to_ptr.vmem [resolvable:$true] %s48_s17 }
   0xc   :  { %54 = dma.hbm_to_vmem [thread:$0]  %s47_s16, 1024, %s49_s17, [#allocation6], %s340_s11, %s340_s11, %s341_s12  }
   0xd   :  { %335 = dma.done.wait [#allocation4], 64  }
   0xe   :  { %336 = vsyncadd [#allocation4], 4294967232 }
   0xf   :  { %337 = dma.done.wait [#allocation6], 1152  }
  0x10   :  { %338 = vsyncadd [#allocation6], 4294966144  ;;  %v245_v1 = vld [vmem:[#allocation5] sm:$0xff]  ;;  %v74_v3 = vld [vmem:[#allocation3] sm:$0xf]  ;;  %vm87_vm0 = vcmask 130048  }
  0x11   :  { %v253_v2 = vld [vmem:[#allocation7 + $0x38] sm:$0xff]  ;;  %98 = vmatpush.bf16.msra.mxu0 %v245_v1  ;;  %v252_v4 = vld [vmem:[#allocation7 + $0x30] sm:$0xff]  ;;  %v251_v5 = vld [vmem:[#allocation7 + $0x28] sm:$0xff]  ;;  %vm200_vm1 = vcmask 7168  }
  0x12   :  { %174 = vmatpush.bf16.msra.mxu1 %v253_v2  ;;  %v250_v6 = vld [vmem:[#allocation7 + $0x20] sm:$0xff]  ;;  %v249_v7 = vld [vmem:[#allocation7 + $0x18] sm:$0xff]  ;;  %v248_v8 = vld [vmem:[#allocation7 + $0x10] sm:$0xff] }
  0x13   :  { %v247_v9 = vld [vmem:[#allocation7 + $0x8] sm:$0xff]  ;;  %v246_v10 = vld [vmem:[#allocation7] sm:$0xff]  ;;  %v259_v11 = vld [vmem:[%s410_s2] ss:$0 sm:$0xff] }
  0x14   :  { %212 = vmatmul.msk.bf16.vlgmr.msra.gmra.mxu0 %vm87_vm0, %v74_v3  ;;  %v260_v17 = vld [vmem:[%s412_s4] ss:$0 sm:$0xff] }
  0x15   :  { %v261_v20 = vld [vmem:[%s413_s5] ss:$0 sm:$0xff] }
  0x16   :  { %175 = vmatpush.bf16.msra.mxu1 %v252_v4  ;;  %v262_v24 = vld [vmem:[#allocation2] ss:$0 sm:$0xff] }
  0x1a   :  { %176 = vmatpush.bf16.msra.mxu1 %v251_v5 }
  0x1e   :  { %177 = vmatpush.bf16.msra.mxu1 %v250_v6 }
  0x22   :  { %178 = vmatpush.bf16.msra.mxu1 %v249_v7 }
  0x26   :  { %179 = vmatpush.bf16.msra.mxu1 %v248_v8 }
  0x2a   :  { %180 = vmatpush.bf16.msra.mxu1 %v247_v9 }
  0x2e   :  { %181 = vmatpush.bf16.msra.mxu1 %v246_v10 }
  0x91   :  { %v100_v12 = vpop.f32.mrf.mxu0 }
  0x92   :  { %v101_v13 = vadd.f32 %v259_v11, %v100_v12 }
  0x94   :  { %v104_v14 = vmax.f32 %v101_v13, 0.0 }
  0x96   :  { %v105_v15 = vpack.c.bf16 %v104_v14, %v104_v14 }
  0x98   :  { %182 = vmatmul.bf16.vlgmr.msra.gmra.mxu1 %v105_v15 }
  0x99   :  { %v102_v16 = vpop.f32.mrf.mxu0 }
 0x115   :  { %v183_v18 = vpop.f32.mrf.mxu1 }
 0x116   :  { %v184_v19 = vadd.f32 %v260_v17, %v183_v18 }
 0x118   :  { %v187_v21 = vmax.f32 %v184_v19, 0.0 }
 0x11a   :  { %v192_v22 = vmul.f32 %v261_v20, %v187_v21 }
 0x11c   :  { %193 = vadd.xlane.f32.xlu0 %v192_v22 }
 0x11d   :  { %v185_v23 = vpop.f32.mrf.mxu1 }
 0x18f   :  { %v194_v25 = vpop.xlane.xlu0 %193 }
 0x190   :  { %v199_v26 = vadd.f32 %v262_v24, %v194_v25 }
 0x192   :  { %201 = vst.msk [vmem:[%s415_s7] sm:$0xff] %vm200_vm1, %v199_v26 }
 0x193   :  { %206 = vsyncpa [#allocation4], 1 }
 0x194   :  { %207 = vsyncpa [#allocation6], 1 }

</bundles_post_ra>
